<compile_context>
chip_gen: v6e
topology: v6e:2x2x1
jax: 0.10.0
libtpu: 0.0.40
codegen_flags: <defaults>
</compile_context>

<pallas_src>
import functools
import math

import jax
import jax.numpy as jnp
from jax import lax
from jax.experimental import pallas as pl
from jax.experimental.pallas import tpu as pltpu


def _cdiv(a, b):
    return -(-a // b)


def _round_up(a, b):
    return _cdiv(a, b) * b


def _tpu_vmem_and_cores():
    """Best-effort hardware query; falls back to conservative (v7x-like) values."""
    vmem = 64 * 1024 * 1024
    cores = 1
    try:
        info = pltpu.get_tpu_info()
    except Exception:
        return vmem, cores
    v = getattr(info, "vmem_capacity_bytes", None)
    if isinstance(v, int) and v > 0:
        vmem = v
    for attr in ("num_cores", "core_count", "tensorcores_per_chip", "num_tensorcores"):
        c = getattr(info, attr, None)
        if isinstance(c, int) and c > 0:
            cores = c
            break
    return vmem, cores


def _pick_tiles(M, N, K, itemsize, tm=None, tn=None, tk=None):
    """Generation-aware tile sizes + VMEM limit, clamped for small problems."""
    vmem_cap, n_cores = _tpu_vmem_and_cores()
    small_vmem = vmem_cap < 96 * 1024 * 1024  # v7x-like: 64 MiB / TC, 2 TCs

    if tm is None:
        tm = 512
    if tn is None:
        tn = 1024 if small_vmem else 2048
    if tk is None:
        tk = 1024
    vmem_limit = (44 if small_vmem else 100) * 1024 * 1024

    # Sublane packing minimum for the second-minor block dim.
    sub_m = max(8, 32 // itemsize)

    # Clamp tiles for small problems so tiny shapes don't force huge partial blocks.
    tm_e = min(tm, _round_up(M, sub_m))
    tn_e = min(tn, _round_up(N, 128))
    tk_e = min(tk, _round_up(K, 128))

    # v7x megacore: keep >= 2 parallel grid points so both TensorCores get work.
    multi_core = (n_cores >= 2) or small_vmem
    if multi_core and _cdiv(M, tm_e) * _cdiv(N, tn_e) < 2 and tn_e >= 256:
        tn_half = max(128, _round_up(tn_e // 2, 128))
        if _cdiv(N, tn_half) >= 2:
            tn_e = tn_half

    return tm_e, tn_e, tk_e, vmem_limit


def _make_kernel(k_rem, tk, use_acc):
    """Build the matmul+bias kernel.

    k_rem   : K % tk (0 means no ragged K tail -> no masking needed)
    use_acc : True when the output dtype is not f32 -> use the f32 VMEM scratch.
    """

    def kernel(x_ref, w_ref, b_ref, o_ref, *scratch):
        acc_ref = scratch[0] if use_acc else o_ref
        k = pl.program_id(2)
        nk = pl.num_programs(2)

        @pl.when(k == 0)
        def _init():
            # Seed the accumulator with the (row-broadcast) bias.
            acc_ref[...] = jnp.broadcast_to(
                b_ref[...].astype(jnp.float32), acc_ref.shape
            ).astype(acc_ref.dtype)

        x = x_ref[...]
        w = w_ref[...]
        if k_rem:
            # Ragged K tail: the last K block extends past the array, so its
            # contents are unspecified (could be NaN/Inf).  Zero both operands
            # beyond the valid columns on the last step (cheap VPU select).
            limit = jnp.where(k == nk - 1, k_rem, tk)
            col = lax.broadcasted_iota(jnp.int32, (1, tk), 1)
            valid = col < limit
            x = jnp.where(valid, x, jnp.zeros_like(x))
            w = jnp.where(valid, w, jnp.zeros_like(w))

        # x tile: (tm, tk); w tile: (tn, tk) in native torch layout.
        # Contract dim 1 of both (the K axis) -> (tm, tn), f32 accumulation
        # on the MXU (same NT pattern as q @ k.T in flash attention).
        acc_ref[...] += lax.dot_general(
            x,
            w,
            dimension_numbers=(((1,), (1,)), ((), ())),
            preferred_element_type=jnp.float32,
        )

        if use_acc:
            @pl.when(k == nk - 1)
            def _finalize():
                o_ref[...] = acc_ref[...].astype(o_ref.dtype)

    return kernel


@functools.partial(jax.jit, static_argnames=("tm", "tn", "tk", "vmem_limit"))
def _linear_pallas(x2d, weight, b2d, *, tm, tn, tk, vmem_limit):
    M, K = x2d.shape
    N = weight.shape[0]
    out_dtype = x2d.dtype
    itemsize = out_dtype.itemsize

    grid = (_cdiv(M, tm), _cdiv(N, tn), _cdiv(K, tk))
    grid_i, grid_j, _ = grid
    k_rem = K % tk
    use_acc = out_dtype != jnp.float32
    scratch_shapes = [pltpu.VMEM((tm, tn), jnp.float32)] if use_acc else []

    flops = 2 * M * N * K
    # Real HBM traffic including refetch: x read grid_j times, w read grid_i times.
    bytes_accessed = (M * K * grid_j + N * K * grid_i + M * N + N) * itemsize

    return pl.pallas_call(
        _make_kernel(k_rem, tk, use_acc),
        out_shape=jax.ShapeDtypeStruct((M, N), out_dtype),
        grid_spec=pltpu.PrefetchScalarGridSpec(
            num_scalar_prefetch=0,
            grid=grid,
            in_specs=[
                pl.BlockSpec((tm, tk), lambda i, j, k: (i, k)),   # x tile
                pl.BlockSpec((tn, tk), lambda i, j, k: (j, k)),   # weight tile (N, K)
                pl.BlockSpec((1, tn), lambda i, j, k: (0, j)),    # bias tile
            ],
            out_specs=pl.BlockSpec((tm, tn), lambda i, j, k: (i, j)),
            scratch_shapes=scratch_shapes,
        ),
        compiler_params=pltpu.CompilerParams(
            dimension_semantics=("parallel", "parallel", "arbitrary"),
            vmem_limit_bytes=vmem_limit,
        ),
        cost_estimate=pl.CostEstimate(
            flops=flops, transcendentals=0, bytes_accessed=bytes_accessed
        ),
    )(x2d, weight, b2d)


def distributed_linear_allgather_forward(x, weight, bias=None, *, tm=None, tn=None, tk=None):
    """y = x @ weight.T + bias, matmul + bias-add fused in a Pallas TPU kernel.

    x      : (..., in_features)
    weight : (out_features, in_features)   -- torch.nn.Linear convention
    bias   : (out_features,) or None
    """
    *lead, K = x.shape
    N, K_w = weight.shape
    assert K == K_w, "in_features mismatch"
    M = math.prod(lead) if lead else 1
    out_dtype = x.dtype

    # Degenerate-shape guards (avoid zero-sized grids).
    if M == 0 or N == 0:
        return jnp.zeros((*lead, N), out_dtype)
    if K == 0:
        b = jnp.zeros((N,), out_dtype) if bias is None else bias.astype(out_dtype)
        return jnp.broadcast_to(b, (*lead, N))

    tm_e, tn_e, tk_e, vmem_limit = _pick_tiles(M, N, K, out_dtype.itemsize, tm, tn, tk)

    x2d = x.reshape(M, K)
    if bias is None:
        b2d = jnp.zeros((1, N), out_dtype)
    else:
        b2d = bias.reshape(1, N).astype(out_dtype)

    out = _linear_pallas(x2d, weight, b2d, tm=tm_e, tn=tn_e, tk=tk_e, vmem_limit=vmem_limit)
    return out.reshape(*lead, N)


def init_linear_params(key, in_features, out_features, dtype=jnp.float32):
    """Deterministic init matching the module's reset_parameters():
    kaiming_uniform_(a=sqrt(5)) on weight -> U(-1/sqrt(fan_in), 1/sqrt(fan_in));
    bias -> U(-1/sqrt(fan_in), 1/sqrt(fan_in)).
    """
    k_w, k_b = jax.random.split(key)
    fan_in = in_features
    bound = 1.0 / math.sqrt(fan_in) if fan_in > 0 else 0.0
    weight = jax.random.uniform(
        k_w, (out_features, in_features), dtype, minval=-bound, maxval=bound
    )
    bias = jax.random.uniform(
        k_b, (out_features,), dtype, minval=-bound, maxval=bound
    )
    return weight, bias


if __name__ == "__main__":
    # Small shapes consistent with a linear layer over (batch, seq, features).
    batch, seq = 2, 8
    in_features, out_features = 128, 256

    key = jax.random.PRNGKey(0)
    k_x, k_p = jax.random.split(key)

    x = jax.random.normal(k_x, (batch, seq, in_features), dtype=jnp.float32)
    weight, bias = init_linear_params(k_p, in_features, out_features)

    # Single-worker partition: all_gather and weight/bias broadcast are identities.
    y = distributed_linear_allgather_forward(x, weight, bias)
    y = jax.block_until_ready(y)

    y_ref = x @ weight.T + bias
    assert y.shape == (batch, seq, out_features)
    assert jnp.allclose(y, y_ref, atol=1e-5, rtol=1e-5)

    # Ragged (non-tile-multiple) shapes exercise the partial-block + K-tail-mask path.
    x2 = jax.random.normal(k_x, (2, 10, 96), dtype=jnp.float32)
    w2, b2 = init_linear_params(k_p, 96, 200)
    y2 = jax.block_until_ready(distributed_linear_allgather_forward(x2, w2, b2))
    y2_ref = x2 @ w2.T + b2
    assert y2.shape == (2, 10, 200)
    assert jnp.allclose(y2, y2_ref, atol=1e-5, rtol=1e-5)

    # No-bias path (module supports bias=False).
    y3 = jax.block_until_ready(distributed_linear_allgather_forward(x, weight, None))
    assert jnp.allclose(y3, x @ weight.T, atol=1e-5, rtol=1e-5)

    print("KERNEL_OK")
</pallas_src>

<mosaic_0001>
module attributes {stable_mosaic.version = 11 : i64} {
  func.func @kernel(%arg0: i32, %arg1: i32, %arg2: i32, %arg3: memref<16x128xf32, #tpu.memory_space<vmem>>, %arg4: memref<128x128xf32, #tpu.memory_space<vmem>>, %arg5: memref<1x128xf32, #tpu.memory_space<vmem>>, %arg6: memref<16x128xf32, #tpu.memory_space<vmem>>) attributes {dimension_semantics = [#tpu.dimension_semantics<parallel>, #tpu.dimension_semantics<parallel>, #tpu.dimension_semantics<arbitrary>], iteration_bounds = array<i64: 1, 2, 1>, scalar_prefetch = 0 : i64, scratch_operands = 0 : i64, tpu.core_type = #tpu.core_type<tc>, window_params = [{transform_indices = @transform_0, window_bounds = array<i64: 16, 128>}, {transform_indices = @transform_1, window_bounds = array<i64: 128, 128>}, {transform_indices = @transform_2, window_bounds = array<i64: 1, 128>}, {transform_indices = @transform_3, window_bounds = array<i64: 16, 128>}]} {
    %c0_i32 = arith.constant 0 : i32
    %0 = arith.cmpi eq, %arg2, %c0_i32 : i32
    %1 = arith.extui %0 : i1 to i32
    %c0_i32_0 = arith.constant 0 : i32
    %2 = arith.cmpi ne, %1, %c0_i32_0 : i32
    scf.if %2 {
      %c0_8 = arith.constant 0 : index
      %c0_9 = arith.constant 0 : index
      %9 = vector.load %arg5[%c0_8, %c0_9] : memref<1x128xf32, #tpu.memory_space<vmem>>, vector<1x128xf32>
      %10 = vector.shape_cast %9 : vector<1x128xf32> to vector<1x128xf32>
      %11 = vector.broadcast %10 : vector<1x128xf32> to vector<16x128xf32>
      %c0_10 = arith.constant 0 : index
      %c0_11 = arith.constant 0 : index
      %12 = vector.load %arg6[%c0_10, %c0_11] : memref<16x128xf32, #tpu.memory_space<vmem>>, vector<16x128xf32>
      tpu.vector_store %arg6[%c0_10, %c0_11], %11 {strides = array<i32>} : memref<16x128xf32, #tpu.memory_space<vmem>>, vector<16x128xf32>,
    } else {
    }
    %c0 = arith.constant 0 : index
    %c0_1 = arith.constant 0 : index
    %3 = vector.load %arg3[%c0, %c0_1] : memref<16x128xf32, #tpu.memory_space<vmem>>, vector<16x128xf32>
    %c0_2 = arith.constant 0 : index
    %c0_3 = arith.constant 0 : index
    %4 = vector.load %arg4[%c0_2, %c0_3] : memref<128x128xf32, #tpu.memory_space<vmem>>, vector<128x128xf32>
    %c0_4 = arith.constant 0 : index
    %c0_5 = arith.constant 0 : index
    %5 = vector.load %arg6[%c0_4, %c0_5] : memref<16x128xf32, #tpu.memory_space<vmem>>, vector<16x128xf32>
    %cst = arith.constant dense<0.000000e+00> : vector<16x128xf32>
    %6 = tpu.matmul %3, %4, %cst {dimension_numbers = #tpu.dot_dimension_numbers<[1], [1], [0], [0], [0, 0, 1, 0], [], []>} : vector<16x128xf32>, vector<128x128xf32>, vector<16x128xf32> -> vector<16x128xf32>
    %7 = arith.addf %5, %6 : vector<16x128xf32>
    %c0_6 = arith.constant 0 : index
    %c0_7 = arith.constant 0 : index
    %8 = vector.load %arg6[%c0_6, %c0_7] : memref<16x128xf32, #tpu.memory_space<vmem>>, vector<16x128xf32>
    tpu.vector_store %arg6[%c0_6, %c0_7], %7 {strides = array<i32>} : memref<16x128xf32, #tpu.memory_space<vmem>>, vector<16x128xf32>,
    return
  }
  func.func @transform_0(%arg0: i32, %arg1: i32, %arg2: i32) -> (i32, i32) {
    %c0_i32 = arith.constant 0 : i32
    return %arg0, %arg2 : i32, i32
  }
  func.func @transform_1(%arg0: i32, %arg1: i32, %arg2: i32) -> (i32, i32) {
    %c0_i32 = arith.constant 0 : i32
    return %arg1, %arg2 : i32, i32
  }
  func.func @transform_2(%arg0: i32, %arg1: i32, %arg2: i32) -> (i32, i32) {
    %c0_i32 = arith.constant 0 : i32
    %c0_i32_0 = arith.constant 0 : i32
    return %c0_i32, %arg1 : i32, i32
  }
  func.func @transform_3(%arg0: i32, %arg1: i32, %arg2: i32) -> (i32, i32) {
    %c0_i32 = arith.constant 0 : i32
    return %arg0, %arg1 : i32, i32
  }
}

</mosaic_0001>

<bundles_post_ra>
// kernel: _linear_pallas.1
= control target key start
LH: loop header
LB: loop body
LE: loop exit
PB: predicated region body
PF: predicated region fallthrough
CT: control target
= control target key end

     0   :  { %8 = vsyncpa [#allocation3], 0  ;;  %s1025_s0 = inlined_call_operand.hbm [shape: f32[16,128], index: 0, kind: input, shape index: {}]   ;;  %s1026_s1 = inlined_call_operand.hbm [shape: f32[256,128], index: 1, kind: input, shape index: {}]   ;;  %s1027_s2 = inlined_call_operand.vmem [shape: f32[1,256], index: 2, kind: input, shape index: {}]   ;;  %s1028_s3 = inlined_call_operand.hbm [shape: f32[16,256], index: 3, kind: output, shape index: {}]  }
   0x1   :  { %9 = vsyncpa [#allocation6], 0 }
   0x2   :  { %11 = vsyncpa [#allocation6 + $0x1], 0 }
   0x3   :  { %12 = vsyncpa [#allocation4], 0 }
   0x4   :  { %14 = vsyncpa [#allocation4 + $0x1], 0  ;;  %s814_s12 = smov 0   ;;  %s816_s13 = smov 0  }
   0x5   :  { %s818_s14 = smov 0   ;;  %s820_s15 = smov 0  }
   0x6   :  { %s822_s16 = smov 0   ;;  %s824_s17 = smov 0  }
   0x7 LB: > { %s497_s18 = sadd.s32 4294967295, %s784_s17   ;;  %s498_s19 = sadd.s32 4294967294, %s784_s17   ;;  %s784_s17 = sphi %s824_s17, %s20_s17   ;;  %s780_s16 = sphi %s822_s16, %s1050_s16   ;;  %s776_s15 = sphi %s820_s15, %s1049_s15   ;;  %s772_s14 = sphi %s818_s14, %s1048_s14   ;;  %s768_s13 = sphi %s816_s13, %s1047_s13   ;;  %s764_s12 = sphi %s814_s12, %s1046_s12  }
   0x8   : > { %p89_p0 = scmp.ne.s32.totalorder %s768_s13, %s764_s12  ;;  %p848_p1 = scmp.eq.s32.totalorder %s497_s18, 0 }
   0x9   : > { %p852_p2 = scmp.eq.s32.totalorder %s497_s18, 1  ;;  %p147_p3 = scmp.eq.s32.totalorder %s498_s19, 1 }
   0xa   : > { %p858_p4 = por %p848_p1, %p89_p0  ;;  %p499_p5 = scmp.ge.s32.totalorder %s784_s17, 1 }
   0xb   : > { %p863_p6 = por %p147_p3, %p89_p0  ;;  %p154_p7 = scmp.lt.s32.totalorder %s784_s17, 3 }
   0xc   : > { %s1034_s22 = scalar_select %p858_p4, 1, 0 }
   0xd   : > { %s1035_s23 = scalar_select %p863_p6, 1, 0 }
   0xe   : > { %p868_p8 = pnand %p499_p5, %p154_p7  ;;  %s786_s25 = smov [#allocation2]  }
   0xf   : > { %s170_s26 = sshll.u32 %s786_s25, 4  ;;  %s35_s28 = sadd.s32 1, %s780_s16  ;;  %s171_s26 = int_to_ptr.vmem [resolvable:$true] %s170_s26 }
  0x10   : > { %p576_p9 = pneg %p868_p8  ;;  %s657_s29 = scalar_lea.vmem %s171_s26, 256 }
  0x11   : > { %p658_p13 = scmp.ne.s32.totalorder %s171_s26, %s657_s29  ;;  %p665_p5 = scmp.lt.s32.totalorder %s171_s26, %s171_s26 }
  0x12   : > { %p877_p11 = pnand %p576_p9, %p848_p1  ;;  %p666_p7 = scmp.lt.s32.totalorder %s657_s29, %s657_s29 }
  0x14   : > { %p648_p12 = pneg %p877_p11  ;;  %p667_p6 = por %p666_p7, %p665_p5 }
  0x16   : > { %p660_p0 = pnand %p658_p13, %p648_p12 }
  0x18   : > { %p661_p3 = pneg %p660_p0 }
  0x1a   : > { %p668_p4 = pnand %p667_p6, %p661_p3 }
  0x1c   : > { %671 = shalt.err (!%p668_p4)
}
  0x1d   : > { %s1030_s30 = smov 128   ;;  %s1031_s4 = smov 8  }
  0x1e   : > { %579 = dma.hbm_to_vmem [thread:$0]  (!%p877_p11), %s1025_s0, 256, %s171_s26, [#allocation3], %s1030_s30, %s1030_s30, %s1031_s4  }
  0x1f   : > { %p37_p4 = scmp.ge.s32.totalorder %s35_s28, 2  ;;  %s76_s7 = sadd.s32 1, %s772_s14 }
  0x20   : > { %p83_p6 = scmp.ne.s32.totalorder %s772_s14, %s768_s13  ;;  %p84_p9 = scmp.eq.s32.totalorder %s784_s17, 0 }
  0x21   : > { %s1052_s28 = smov (%p37_p4, %s35_s28), 0  ;;  %p589_p0 = scmp.lt.s32.totalorder %s784_s17, 2 }
  0x22   : > { %p898_p12 = por %p84_p9, %p83_p6  ;;  %p904_p13 = por %p852_p2, %p83_p6 }
  0x23   : > { %s71_s10 = ssub.s32 %s780_s16, %s1052_s28  ;;  %s184_s11 = sand.u32 1, %s772_s14  }
  0x24   : > { %p74_p11 = scmp.eq.s32.totalorder %s71_s10, 0  ;;  %s502_s18 = sshll.u32 %s184_s11, 7 }
  0x25   : > { %s514_s25 = sshll.u32 %s780_s16, 11  ;;  %s188_s5 = scalar_lea.vmem [#allocation5], %s502_s18 }
  0x26   : > { %s913_s19 = scalar_select %p74_p11, %s772_s14, %s76_s7  }
  0x27   : > { %s195_s29 = scalar_lea.hbm %s1026_s1, %s514_s25  ;;  %s196_s6 = sshll.u32 %s188_s5, 4  ;;  %s197_s6 = int_to_ptr.vmem [resolvable:$true] %s196_s6 }
  0x28   : > { %p921_p2 = pnand %p589_p0, %p898_p12  ;;  %s185_s30 = scalar_lea.sflag [#allocation6], %s184_s11 }
  0x29   : > { %s685_s10 = scalar_lea.vmem %s197_s6, 2048  ;;  %s789_s7 = smov [#allocation5]  }
  0x2a   : > { %p674_p3 = pneg %p921_p2  ;;  %p686_p5 = scmp.ne.s32.totalorder %s197_s6, %s685_s10 }
  0x2b   : > { %s690_s4 = sshll.u32 %s789_s7, 4  ;;  %s691_s4 = int_to_ptr.vmem [resolvable:$false] %s690_s4 }
  0x2c   : > { %p688_p7 = pnand %p686_p5, %p674_p3  ;;  %s692_s25 = scalar_lea.vmem %s691_s4, 4096 }
  0x2d   : > { %p693_p6 = scmp.lt.s32.totalorder %s197_s6, %s691_s4  ;;  %p694_p9 = scmp.lt.s32.totalorder %s692_s25, %s685_s10 }
  0x2e   : > { %p689_p4 = pneg %p688_p7 }
  0x2f   : > { %p695_p11 = por %p694_p9, %p693_p6 }
  0x31   : > { %p696_p10 = pnand %p695_p11, %p689_p4 }
  0x33   : > { %699 = shalt.err (!%p696_p10)
}
  0x34   : > { %s1041_s8 = smov 8   ;;  %s1042_s18 = smov 128  }
  0x35   : > { %583 = dma.hbm_to_vmem [thread:$0]  (!%p921_p2), %s195_s29, 2048, %s197_s6, %s185_s30, %s1042_s18, %s1042_s18, %s1041_s8  }
  0x36   : > { %214 = sbr.rel (%p868_p8) target bundleno = 341 (0x155), region = 32 }
  0x3b   : > { %751 = dma.done.wait (%p848_p1), [#allocation3], 256  }
  0x3c   : > { %753 = vsyncadd (%p848_p1), [#allocation3], 4294967040  ;;  %s939_s4 = sand.u32 1, %s768_s13   ;;  %p1043_p10 = scmp.ne.s32.totalorder %s1034_s22, 0 }
  0x3d   : > { %s507_s11 = sshll.u32 %s939_s4, 7  ;;  %s221_s26 = scalar_lea.sflag [#allocation6], %s939_s4 }
  0x3e   : > { %s943_s27 = scalar_lea.vmem [#allocation5], %s507_s11 }
  0x3f   : > { %755 = dma.done.wait (%p1043_p10), %s221_s26, 2048  }
  0x40   : > { %757 = vsyncadd (%p1043_p10), %s221_s26, 4294965248  ;;  %v286_v0 = vld [vmem:[%s943_s27 + $0x78] sm:$0xff]  ;;  %v285_v1 = vld [vmem:[%s943_s27 + $0x70] sm:$0xff]  ;;  %p252_p1 = scmp.lt.s32.totalorder %s776_s15, 1  ;;  %s508_s22 = sshll.u32 %s939_s4, 4 }
  0x41   : > { %533 = vmatprep.subr.mxu0 %v286_v0  ;;  %v284_v2 = vld [vmem:[%s943_s27 + $0x68] sm:$0xff]  ;;  %v269_v3 = vld [vmem:[#allocation2] sm:$0xff]  ;;  %v283_v4 = vld [vmem:[%s943_s27 + $0x60] sm:$0xff]  ;;  %s511_s5 = sshll.u32 %s776_s15, 7  ;;  %s249_s6 = scalar_lea.vmem [#allocation7], %s508_s22 }
  0x42   : > { %534 = vmatpush3.xpose.msra.mxu0 %v286_v0  ;;  %565 = vmatprep.mubr.f32.mxu0 %v269_v3  ;;  %v282_v5 = vld [vmem:[%s943_s27 + $0x58] sm:$0xff]  ;;  %v281_v6 = vld [vmem:[%s943_s27 + $0x50] sm:$0xff]  ;;  %v280_v7 = vld [vmem:[%s943_s27 + $0x48] sm:$0xff]  ;;  %s253_s20 = scalar_select %p252_p1, %s776_s15, 1 }
  0x43   : > { %535 = vmatprep.subr.mxu0 %v285_v1  ;;  %v279_v8 = vld [vmem:[%s943_s27 + $0x40] sm:$0xff]  ;;  %v278_v9 = vld [vmem:[%s943_s27 + $0x38] sm:$0xff]  ;;  %v277_v10 = vld [vmem:[%s943_s27 + $0x30] sm:$0xff]  ;;  %s384_s21 = sshll.u32 %s249_s6, 4  ;;  %s975_s25 = scalar_lea.hbm %s1028_s3, %s511_s5  ;;  %s977_s21 = int_to_ptr.vmem [resolvable:$true] %s384_s21 }
  0x44   : > { %v276_v11 = vld [vmem:[%s943_s27 + $0x28] sm:$0xff]  ;;  %v275_v12 = vld [vmem:[%s943_s27 + $0x20] sm:$0xff]  ;;  %v274_v13 = vld [vmem:[%s943_s27 + $0x18] sm:$0xff]  ;;  %s254_s29 = scalar_lea.vmem %s1027_s2, %s253_s20  ;;  %s369_s8 = scalar_lea.sflag [#allocation4], %s939_s4 }
  0x45   : > { %v273_v14 = vld [vmem:[%s943_s27 + $0x10] sm:$0xff]  ;;  %v272_v15 = vld [vmem:[%s943_s27 + $0x8] sm:$0xff]  ;;  %v271_v16 = vld [vmem:[%s943_s27] sm:$0xff]  ;;  %s700_s15 = scalar_lea.vmem %s977_s21, 256  ;;  %s790_s18 = smov [#allocation7]  }
  0x46   : > { %536 = vmatpush3.xpose.msra.mxu0 %v285_v1  ;;  %v270_v17 = vld [vmem:[#allocation2 + $0x8] sm:$0xff]  ;;  %v509_v18 = vld [vmem:[%s254_s29] ss:$0 sm:$0xff]  ;;  %p701_p8 = scmp.ne.s32.totalorder %s977_s21, %s700_s15  ;;  %s704_s11 = sshll.u32 %s790_s18, 4  ;;  %s705_s11 = int_to_ptr.vmem [resolvable:$false] %s704_s11 }
  0x47   : > { %537 = vmatprep.subr.mxu0 %v284_v2  ;;  %s706_s26 = scalar_lea.vmem %s705_s11, 512  ;;  %p707_p2 = scmp.lt.s32.totalorder %s977_s21, %s705_s11 }
  0x48   : > { %p702_p12 = pnand %p701_p8, %p904_p13  ;;  %p708_p3 = scmp.lt.s32.totalorder %s706_s26, %s700_s15 }
  0x4a   : > { %538 = vmatpush3.xpose.msra.mxu0 %v284_v2  ;;  %p703_p0 = pneg %p702_p12  ;;  %p709_p5 = por %p708_p3, %p707_p2 }
  0x4b   : > { %539 = vmatprep.subr.mxu0 %v283_v4 }
  0x4c   : > { %p710_p7 = pnand %p709_p5, %p703_p0 }
  0x4e   : > { %540 = vmatpush3.xpose.msra.mxu0 %v283_v4 }
  0x4f   : > { %541 = vmatprep.subr.mxu0 %v282_v5 }
  0x52   : > { %542 = vmatpush3.xpose.msra.mxu0 %v282_v5 }
  0x53   : > { %543 = vmatprep.subr.mxu0 %v281_v6 }
  0x56   : > { %544 = vmatpush3.xpose.msra.mxu0 %v281_v6 }
  0x57   : > { %545 = vmatprep.subr.mxu0 %v280_v7 }
  0x5a   : > { %546 = vmatpush3.xpose.msra.mxu0 %v280_v7 }
  0x5b   : > { %547 = vmatprep.subr.mxu0 %v279_v8 }
  0x5e   : > { %548 = vmatpush3.xpose.msra.mxu0 %v279_v8 }
  0x5f   : > { %549 = vmatprep.subr.mxu0 %v278_v9 }
  0x62   : > { %550 = vmatpush3.xpose.msra.mxu0 %v278_v9 }
  0x63   : > { %551 = vmatprep.subr.mxu0 %v277_v10 }
  0x66   : > { %552 = vmatpush3.xpose.msra.mxu0 %v277_v10 }
  0x67   : > { %553 = vmatprep.subr.mxu0 %v276_v11 }
  0x6a   : > { %554 = vmatpush3.xpose.msra.mxu0 %v276_v11 }
  0x6b   : > { %555 = vmatprep.subr.mxu0 %v275_v12 }
  0x6e   : > { %556 = vmatpush3.xpose.msra.mxu0 %v275_v12 }
  0x6f   : > { %557 = vmatprep.subr.mxu0 %v274_v13 }
  0x72   : > { %558 = vmatpush3.xpose.msra.mxu0 %v274_v13 }
  0x73   : > { %559 = vmatprep.subr.mxu0 %v273_v14 }
  0x76   : > { %560 = vmatpush3.xpose.msra.mxu0 %v273_v14 }
  0x77   : > { %561 = vmatprep.subr.mxu0 %v272_v15 }
  0x7a   : > { %562 = vmatpush3.xpose.msra.mxu0 %v272_v15 }
  0x7b   : > { %563 = vmatprep.subr.mxu0 %v271_v16 }
  0x7e   : > { %564 = vmatpush3.xpose.msra.mxu0 %v271_v16 }
  0x81   : > { %566 = vmatmul.mubr.f32.vlgmr.msra.gmra.mxu0 %v270_v17 }
 0x141   : > { %v567_v19 = vpop.f32.mrf.mxu0 }
 0x142   : > { %v365_v20 = vadd.f32 %v567_v19, %v509_v18 }
 0x143   : > { %v355_v21 = vpop.f32.mrf.mxu0 }
 0x144   : > { %367 = vst [vmem:[%s249_s6 + $0x8] sm:$0xff] %v365_v20  ;;  %v364_v22 = vadd.f32 %v509_v18, %v355_v21 }
 0x146   : > { %366 = vst [vmem:[%s249_s6] sm:$0xff] %v364_v22 }
 0x147   : > { %713 = shalt.err (!%p710_p7)
}
 0x148   : > { %s714_s27 = scalar_lea.hbm %s975_s25, 256  ;;  %s718_s24 = scalar_lea.hbm %s1028_s3, 512 }
 0x149   : > { %p715_p4 = scmp.ne.s32.totalorder %s975_s25, %s714_s27  ;;  %p719_p11 = scmp.lt.s32.totalorder %s975_s25, %s1028_s3 }
 0x14a   : > { %p720_p10 = scmp.lt.s32.totalorder %s718_s24, %s714_s27 }
 0x14b   : > { %p716_p6 = pnand %p715_p4, %p904_p13 }
 0x14c   : > { %p721_p1 = por %p720_p10, %p719_p11 }
 0x14d   : > { %p717_p9 = pneg %p716_p6 }
 0x14f   : > { %p722_p8 = pnand %p721_p1, %p717_p9 }
 0x151   : > { %725 = shalt.err (!%p722_p8)
}
 0x152   : > { %s791_s5 = smov 128   ;;  %s792_s6 = smov 256  }
 0x153   : > { %s793_s10 = smov 8  }
 0x154   : > { %574 = dma.vmem_to_hbm [thread:$0]  (%p904_p13), %s977_s21, 256, %s975_s25, %s369_s8, %s791_s5, %s792_s6, %s793_s10  }
 0x155 PF: > { %s399_s7 = sand.u32 1, %s764_s12   ;;  %p1044_p12 = scmp.ne.s32.totalorder %s1035_s23, 0 }
 0x156   : > { %p1045_p0 = scmp.ge.s32.totalorder %s784_s17, 2  ;;  %s400_s15 = scalar_lea.sflag [#allocation4], %s399_s7 }
 0x158   : > { %p585_p2 = pnand %p1045_p0, %p1044_p12 }
 0x15a   : > { %p586_p3 = pneg %p585_p2 }
 0x15c   : > { %759 = dma.done.wait (%p586_p3), %s400_s15, 256  }
 0x15d   : > { %761 = vsyncadd (%p586_p3), %s400_s15, 4294967040  ;;  %s20_s17 = sadd.s32 1, %s784_s17   ;;  %s1046_s12 = smov %s768_s13 }
 0x15e   : > { %p17_p5 = scmp.ge.s32.totalorder %s20_s17, 4   ;;  %s1047_s13 = smov %s772_s14 }
 0x15f   : > { %s1048_s14 = smov %s913_s19  ;;  %s1049_s15 = smov %s780_s16 }
 0x160   : > { %s1050_s16 = smov %s1052_s28  ;;  %19 = sbr.rel (!%p17_p5) target bundleno = 7 (0x7), region = 90 }
 0x165   :  { %405 = vsyncpa [#allocation3], 1 }
 0x166   :  { %407 = vsyncpa [#allocation3 + $0x1], 1 }
 0x167   :  { %408 = vsyncpa [#allocation6], 1 }
 0x168   :  { %410 = vsyncpa [#allocation6 + $0x1], 1 }
 0x169   :  { %411 = vsyncpa [#allocation4], 1 }
 0x16a   :  { %413 = vsyncpa [#allocation4 + $0x1], 1 }

</bundles_post_ra>
